<compile_context>
chip_gen: v5e
topology: v5e:2x2
jax: 0.10.0
libtpu: 0.0.40
codegen_flags: <defaults>
</compile_context>

<pallas_src>
import functools

import jax
import jax.numpy as jnp
from jax.experimental import pallas as pl
from jax.experimental.pallas import tpu as pltpu


def _round_up(x, m):
    return (x + m - 1) // m * m


def _cdiv(a, b):
    return -(-a // b)


def _leaky_relu(x, negative_slope=0.01):
    # matches torch.nn.LeakyReLU default
    return jnp.where(x >= 0, x, negative_slope * x)


def _vmem_capacity_bytes():
    """Physical per-core VMEM; conservative 64 MiB (v7x-class) fallback on failure."""
    try:
        return int(pltpu.get_tpu_info().vmem_capacity_bytes)
    except Exception:
        return 64 << 20


# --------------------------------- kernel -----------------------------------------


def _encoder_kernel(y_ref, w1_ref, b1_ref, wr_ref, br_ref, wz_ref, bz_ref,
                    out_ref, *, latent_dim):
    # Layer 0: Linear(D, H) + LeakyReLU.  y/w1 are bf16; f32 MXU accumulation.
    h = jnp.dot(y_ref[...], w1_ref[...], preferred_element_type=jnp.float32)
    h = _leaky_relu(h + b1_ref[...])

    # Layer 1: ResidLinear(H, H): act(linear(x) + x).  bf16 operands keep the MXU in
    # native (single-pass) mode; bias and residual add stay f32.
    hr = jnp.dot(h.astype(wr_ref.dtype), wr_ref[...],
                 preferred_element_type=jnp.float32) + br_ref[...]
    h = _leaky_relu(hr + h)

    # Final combined linear.  Columns of wz are [w_mu | w_logstd | w_logstd | 0-pad],
    # so the result is [mu | logstd | logstd | 0] with no in-kernel slicing needed.
    z = jnp.dot(h.astype(wz_ref.dtype), wz_ref[...],
                preferred_element_type=jnp.float32) + bz_ref[...]

    # exp() only materializes on the std lane region (>= 2*latent); all other lanes
    # (including zero padding) pass through unchanged.  Single lane-dense f32 store.
    col = jax.lax.broadcasted_iota(jnp.int32, z.shape, 1)
    out_ref[...] = jnp.where(col >= 2 * latent_dim, jnp.exp(z), z)


# ------------------------------ parameter packing ----------------------------------


def pack_encoder_params(params, latent_dim, *, input_dtype=jnp.bfloat16,
                        weight_dtype=jnp.bfloat16):
    """One-time weight layout prep (call once, reuse across forward calls).

    All dims are zero-padded to lane multiples of 128 (exact: padded rows/cols
    contribute nothing).  Returns (packed_weights, (D, H, L)).
    """
    w1, b1, wr, br, w2, b2 = params
    D, H = int(w1.shape[0]), int(w1.shape[1])
    L = int(latent_dim)
    Dp, Hp, P = _round_up(D, 128), _round_up(H, 128), _round_up(3 * L, 128)

    b1 = jnp.asarray(b1, jnp.float32).reshape(1, -1)
    br = jnp.asarray(br, jnp.float32).reshape(1, -1)
    b2 = jnp.asarray(b2, jnp.float32).reshape(1, -1)

    w1p = jnp.zeros((Dp, Hp), jnp.float32).at[:D, :H].set(w1).astype(input_dtype)
    b1p = jnp.zeros((1, Hp), jnp.float32).at[:, :H].set(b1)
    wrp = jnp.zeros((Hp, Hp), jnp.float32).at[:H, :H].set(wr).astype(weight_dtype)
    brp = jnp.zeros((1, Hp), jnp.float32).at[:, :H].set(br)
    # combined output weight: [w_mu | w_logstd | w_logstd(->std)], zero-padded to P
    wzp = (jnp.zeros((Hp, P), jnp.float32)
           .at[:H, 0:L].set(w2[:, :L])
           .at[:H, L:2 * L].set(w2[:, L:])
           .at[:H, 2 * L:3 * L].set(w2[:, L:])).astype(weight_dtype)
    bzp = (jnp.zeros((1, P), jnp.float32)
           .at[:, 0:L].set(b2[:, :L])
           .at[:, L:2 * L].set(b2[:, L:])
           .at[:, 2 * L:3 * L].set(b2[:, L:]))
    return (w1p, b1p, wrp, brp, wzp, bzp), (D, H, L)


# ---------------------------------- forward ----------------------------------------


def encoder_forward(y, packed, *, tile_b=None):
    """y: (B, *data_dim).  packed = pack_encoder_params(...).
    Returns (z_mu, z_logstd, z_std), each (B, latent_dim) float32."""
    (w1p, b1p, wrp, brp, wzp, bzp), (D, H, L) = packed
    Dp, Hp = int(w1p.shape[0]), int(w1p.shape[1])
    P = int(wzp.shape[1])
    in_bytes = jnp.dtype(w1p.dtype).itemsize
    w_bytes = jnp.dtype(wrp.dtype).itemsize

    B = int(y.shape[0])
    y_flat = y.reshape(B, -1)             # torch.flatten(y, start_dim=1)
    assert y_flat.shape[1] == D, (y_flat.shape, D)

    # ---- generation-aware budgets --------------------------------------------------
    vmem_cap = _vmem_capacity_bytes()
    if vmem_cap <= (64 << 20) + (1 << 20):
        # v7x-class: 64 MiB per TensorCore -> leave compiler scratch headroom.
        vmem_ceiling = 52 << 20
        input_tile_budget = 8 << 20
    else:
        # v5e / v6e: 128 MiB physical VMEM -> allow much larger tiles.
        vmem_ceiling = 100 << 20
        input_tile_budget = 16 << 20

    # resident weight footprint (x2 conservatively covers the double-buffered
    # fallback if single-buffering of the constant-index weights is unavailable)
    weight_vmem = 2 * (Dp * Hp * in_bytes + (Hp * Hp + Hp * P) * w_bytes
                       + (2 * Hp + P) * 4)
    act_row = 12 * Hp + 8 * P                       # per-row intermediates (f32/bf16)
    per_row = 2 * Dp * in_bytes + 2 * P * 4 + act_row

    sub = 8 * (4 // in_bytes)                       # sublane multiple (16 for bf16)
    Bq = _round_up(B, sub)                          # minimal padded batch

    if tile_b is None:
        avail = max(vmem_ceiling - weight_vmem - (2 << 20), per_row * sub)
        tb_vmem = max(sub, avail // per_row // sub * sub)
        tb_dma = max(sub, input_tile_budget // (Dp * in_bytes) // sub * sub)
        tile_b = int(min(tb_vmem, tb_dma, Bq))
        # Force an even >=2-step grid when the batch allows, so the "parallel"
        # batch axis can be split across both TensorCores on v7x.
        n = _cdiv(Bq, tile_b)
        if n == 1 and Bq >= 2 * sub:
            n = 2
        elif n > 1 and n % 2 == 1 and Bq // (n + 1) >= sub:
            n += 1
        tile_b = _round_up(_cdiv(Bq, n), sub)
    TB = int(_round_up(max(int(tile_b), sub), sub))
    Bp = _round_up(max(Bq, TB), TB)
    grid = (Bp // TB,)

    # ---- single-pass input prep: cast to kernel dtype, pad only if actually needed
    y_cast = y_flat.astype(w1p.dtype)
    if Bp != B or Dp != D:
        y_pad = jnp.pad(y_cast, ((0, Bp - B), (0, Dp - D)))
    else:
        y_pad = y_cast

    # ---- VMEM limit / cost estimate -------------------------------------------------
    vmem_est = (2 * TB * Dp * in_bytes      # double-buffered input tile
                + 2 * TB * P * 4            # double-buffered output tile
                + weight_vmem               # resident weights (incl. fallback margin)
                + TB * act_row)             # intermediate activations
    vmem_limit = int(min(max(2 * vmem_est, 32 << 20), vmem_ceiling))

    flops = 2 * Bp * (Dp * Hp + Hp * Hp + Hp * P)
    transcendentals = Bp * P
    bytes_accessed = (Bp * Dp * in_bytes + Bp * P * 4
                      + Dp * Hp * in_bytes + (Hp * Hp + Hp * P) * w_bytes
                      + (2 * Hp + P) * 4)

    const_map = lambda i: (0, 0)
    kernel = functools.partial(_encoder_kernel, latent_dim=L)

    def build(weight_pipeline_mode):
        def wspec(shape):
            if weight_pipeline_mode is None:
                return pl.BlockSpec(shape, const_map)
            return pl.BlockSpec(shape, const_map, pipeline_mode=weight_pipeline_mode)

        return pl.pallas_call(
            kernel,
            out_shape=jax.ShapeDtypeStruct((Bp, P), jnp.float32),
            grid=grid,
            in_specs=[
                pl.BlockSpec((TB, Dp), lambda i: (i, 0)),   # y tile (pipelined)
                wspec((Dp, Hp)),                            # w1 (resident)
                wspec((1, Hp)),                             # b1
                wspec((Hp, Hp)),                            # wr
                wspec((1, Hp)),                             # br
                wspec((Hp, P)),                             # combined output weight
                wspec((1, P)),                              # combined output bias
            ],
            out_specs=pl.BlockSpec((TB, P), lambda i: (i, 0)),
            compiler_params=pltpu.CompilerParams(
                dimension_semantics=("parallel",),
                vmem_limit_bytes=vmem_limit,
            ),
            cost_estimate=pl.CostEstimate(
                flops=int(flops),
                transcendentals=int(transcendentals),
                bytes_accessed=int(bytes_accessed),
            ),
        )

    args = (y_pad, w1p, b1p, wrp, brp, wzp, bzp)
    try:
        # Weights have constant index_maps -> a single VMEM buffer suffices,
        # halving their resident footprint (most valuable on v7x's 64 MiB VMEM).
        out_full = build(pl.Buffered(1))(*args)
    except Exception:
        # Graceful fallback to the default double-buffered pipeline.
        out_full = build(None)(*args)

    out = out_full[:B]
    z_mu = out[:, :L]
    z_logstd = out[:, L:2 * L]
    z_std = out[:, 2 * L:3 * L]
    return z_mu, z_logstd, z_std


# --------------------------------- utilities ---------------------------------------


def init_params(key, input_dim, hidden_dim, latent_dim):
    """Deterministic parameter init (PyTorch-style uniform(-1/sqrt(fan_in), +))."""
    ks = jax.random.split(key, 6)

    def lin(kw, kb, n_in, n_out):
        bound = 1.0 / jnp.sqrt(n_in)
        w = jax.random.uniform(kw, (n_in, n_out), jnp.float32, -bound, bound)
        b = jax.random.uniform(kb, (1, n_out), jnp.float32, -bound, bound)
        return w, b

    w1, b1 = lin(ks[0], ks[1], input_dim, hidden_dim)
    wr, br = lin(ks[2], ks[3], hidden_dim, hidden_dim)
    w2, b2 = lin(ks[4], ks[5], hidden_dim, 2 * latent_dim)
    return (w1, b1, wr, br, w2, b2)


def _reference(y, params, latent_dim, dtype=jnp.bfloat16):
    """Pure-JAX reference mirroring the kernel's bf16 matmul / f32 accumulation path."""
    w1, b1, wr, br, w2, b2 = params
    yf = y.reshape(y.shape[0], -1)
    h = jnp.dot(yf.astype(dtype), w1.astype(dtype),
                preferred_element_type=jnp.float32)
    h = _leaky_relu(h + b1)
    h = _leaky_relu(jnp.dot(h.astype(dtype), wr.astype(dtype),
                            preferred_element_type=jnp.float32) + br + h)
    z = jnp.dot(h.astype(dtype), w2.astype(dtype),
                preferred_element_type=jnp.float32) + b2
    return z[:, :latent_dim], z[:, latent_dim:], jnp.exp(z[:, latent_dim:])


def _reference_f32(y, params, latent_dim):
    """Full-f32 reference (matches the original PyTorch math)."""
    w1, b1, wr, br, w2, b2 = params
    h = _leaky_relu(y.reshape(y.shape[0], -1) @ w1 + b1)
    h = _leaky_relu(h @ wr + br + h)
    z = h @ w2 + b2
    return z[:, :latent_dim], z[:, latent_dim:], jnp.exp(z[:, latent_dim:])


if __name__ == "__main__":
    # Small, deterministic shapes consistent with the module.
    B = 2
    data_dim = (4, 16, 16)        # e.g. a 4-channel 16x16 image
    input_dim = 4 * 16 * 16       # 1024
    hidden_dim = 32
    latent_dim = 8

    key = jax.random.PRNGKey(0)
    k_x, k_p = jax.random.split(key)
    y = jax.random.normal(k_x, (B,) + data_dim, dtype=jnp.float32)
    params = init_params(k_p, input_dim, hidden_dim, latent_dim)

    # One-time weight packing (hoisted out of the forward pass).
    packed = pack_encoder_params(params, latent_dim)

    z_mu, z_logstd, z_std = jax.block_until_ready(encoder_forward(y, packed))

    assert z_mu.shape == (B, latent_dim)
    assert z_logstd.shape == (B, latent_dim)
    assert z_std.shape == (B, latent_dim)

    # Check against the matching-precision (bf16 matmul, f32 accumulate) reference ...
    r_mu, r_logstd, r_std = _reference(y, params, latent_dim)
    assert jnp.allclose(z_mu, r_mu, atol=1e-3, rtol=1e-3)
    assert jnp.allclose(z_logstd, r_logstd, atol=1e-3, rtol=1e-3)
    assert jnp.allclose(z_std, r_std, atol=1e-3, rtol=1e-3)

    # ... and a looser sanity check against the pure-f32 PyTorch-equivalent math.
    f_mu, f_logstd, f_std = _reference_f32(y, params, latent_dim)
    assert jnp.allclose(z_mu, f_mu, atol=5e-2, rtol=5e-2)
    assert jnp.allclose(z_logstd, f_logstd, atol=5e-2, rtol=5e-2)
    assert jnp.allclose(z_std, f_std, atol=5e-2, rtol=5e-2)

    print("KERNEL_OK")
</pallas_src>

<mosaic_0001>
module attributes {stable_mosaic.version = 11 : i64} {
  func.func @_encoder_kernel(%arg0: i32, %arg1: memref<16x1024xbf16, #tpu.memory_space<vmem>>, %arg2: memref<1024x128xbf16, #tpu.memory_space<vmem>>, %arg3: memref<1x128xf32, #tpu.memory_space<vmem>>, %arg4: memref<128x128xbf16, #tpu.memory_space<vmem>>, %arg5: memref<1x128xf32, #tpu.memory_space<vmem>>, %arg6: memref<128x128xbf16, #tpu.memory_space<vmem>>, %arg7: memref<1x128xf32, #tpu.memory_space<vmem>>, %arg8: memref<16x128xf32, #tpu.memory_space<vmem>>) attributes {dimension_semantics = [#tpu.dimension_semantics<parallel>], iteration_bounds = array<i64: 1>, scalar_prefetch = 0 : i64, scratch_operands = 0 : i64, tpu.core_type = #tpu.core_type<tc>, window_params = [{transform_indices = @transform_0, window_bounds = array<i64: 16, 1024>}, {pipeline_mode = #tpu.pipeline_mode<synchronous>, transform_indices = @transform_1, window_bounds = array<i64: 1024, 128>}, {pipeline_mode = #tpu.pipeline_mode<synchronous>, transform_indices = @transform_2, window_bounds = array<i64: 1, 128>}, {pipeline_mode = #tpu.pipeline_mode<synchronous>, transform_indices = @transform_3, window_bounds = array<i64: 128, 128>}, {pipeline_mode = #tpu.pipeline_mode<synchronous>, transform_indices = @transform_4, window_bounds = array<i64: 1, 128>}, {pipeline_mode = #tpu.pipeline_mode<synchronous>, transform_indices = @transform_5, window_bounds = array<i64: 128, 128>}, {pipeline_mode = #tpu.pipeline_mode<synchronous>, transform_indices = @transform_6, window_bounds = array<i64: 1, 128>}, {transform_indices = @transform_7, window_bounds = array<i64: 16, 128>}]} {
    %c0 = arith.constant 0 : index
    %c0_0 = arith.constant 0 : index
    %0 = vector.load %arg1[%c0, %c0_0] : memref<16x1024xbf16, #tpu.memory_space<vmem>>, vector<16x1024xbf16>
    %c0_1 = arith.constant 0 : index
    %c0_2 = arith.constant 0 : index
    %1 = vector.load %arg2[%c0_1, %c0_2] : memref<1024x128xbf16, #tpu.memory_space<vmem>>, vector<1024x128xbf16>
    %cst = arith.constant dense<0.000000e+00> : vector<16x128xf32>
    %2 = tpu.matmul %0, %1, %cst {dimension_numbers = #tpu.dot_dimension_numbers<[1], [0], [0], [1], [0, 0, 1, 1], [], []>} : vector<16x1024xbf16>, vector<1024x128xbf16>, vector<16x128xf32> -> vector<16x128xf32>
    %c0_3 = arith.constant 0 : index
    %c0_4 = arith.constant 0 : index
    %3 = vector.load %arg3[%c0_3, %c0_4] : memref<1x128xf32, #tpu.memory_space<vmem>>, vector<1x128xf32>
    %4 = vector.broadcast %3 : vector<1x128xf32> to vector<16x128xf32>
    %5 = arith.addf %2, %4 : vector<16x128xf32>
    %cst_5 = arith.constant 0.000000e+00 : f32
    %6 = vector.broadcast %cst_5 : f32 to vector<16x128xf32>
    %7 = arith.cmpf oge, %5, %6 : vector<16x128xf32>
    %cst_6 = arith.constant 0.00999999977 : f32
    %8 = vector.broadcast %cst_6 : f32 to vector<16x128xf32>
    %9 = arith.mulf %8, %5 : vector<16x128xf32>
    %10 = arith.select %7, %5, %9 : vector<16x128xi1>, vector<16x128xf32>
    %11 = arith.truncf %10 : vector<16x128xf32> to vector<16x128xbf16>
    %c0_7 = arith.constant 0 : index
    %c0_8 = arith.constant 0 : index
    %12 = vector.load %arg4[%c0_7, %c0_8] : memref<128x128xbf16, #tpu.memory_space<vmem>>, vector<128x128xbf16>
    %cst_9 = arith.constant dense<0.000000e+00> : vector<16x128xf32>
    %13 = tpu.matmul %11, %12, %cst_9 {dimension_numbers = #tpu.dot_dimension_numbers<[1], [0], [0], [1], [0, 0, 1, 1], [], []>} : vector<16x128xbf16>, vector<128x128xbf16>, vector<16x128xf32> -> vector<16x128xf32>
    %c0_10 = arith.constant 0 : index
    %c0_11 = arith.constant 0 : index
    %14 = vector.load %arg5[%c0_10, %c0_11] : memref<1x128xf32, #tpu.memory_space<vmem>>, vector<1x128xf32>
    %15 = vector.broadcast %14 : vector<1x128xf32> to vector<16x128xf32>
    %16 = arith.addf %13, %15 : vector<16x128xf32>
    %17 = arith.addf %16, %10 : vector<16x128xf32>
    %cst_12 = arith.constant 0.000000e+00 : f32
    %18 = vector.broadcast %cst_12 : f32 to vector<16x128xf32>
    %19 = arith.cmpf oge, %17, %18 : vector<16x128xf32>
    %cst_13 = arith.constant 0.00999999977 : f32
    %20 = vector.broadcast %cst_13 : f32 to vector<16x128xf32>
    %21 = arith.mulf %20, %17 : vector<16x128xf32>
    %22 = arith.select %19, %17, %21 : vector<16x128xi1>, vector<16x128xf32>
    %23 = arith.truncf %22 : vector<16x128xf32> to vector<16x128xbf16>
    %c0_14 = arith.constant 0 : index
    %c0_15 = arith.constant 0 : index
    %24 = vector.load %arg6[%c0_14, %c0_15] : memref<128x128xbf16, #tpu.memory_space<vmem>>, vector<128x128xbf16>
    %cst_16 = arith.constant dense<0.000000e+00> : vector<16x128xf32>
    %25 = tpu.matmul %23, %24, %cst_16 {dimension_numbers = #tpu.dot_dimension_numbers<[1], [0], [0], [1], [0, 0, 1, 1], [], []>} : vector<16x128xbf16>, vector<128x128xbf16>, vector<16x128xf32> -> vector<16x128xf32>
    %c0_17 = arith.constant 0 : index
    %c0_18 = arith.constant 0 : index
    %26 = vector.load %arg7[%c0_17, %c0_18] : memref<1x128xf32, #tpu.memory_space<vmem>>, vector<1x128xf32>
    %27 = vector.broadcast %26 : vector<1x128xf32> to vector<16x128xf32>
    %28 = arith.addf %25, %27 : vector<16x128xf32>
    %29 = tpu.iota {dimensions = array<i32: 1>} : vector<16x128xi32>
    %c16_i32 = arith.constant 16 : i32
    %30 = vector.broadcast %c16_i32 : i32 to vector<16x128xi32>
    %31 = arith.cmpi sge, %29, %30 : vector<16x128xi32>
    %32 = math.exp %28 : vector<16x128xf32>
    %33 = arith.select %31, %32, %28 : vector<16x128xi1>, vector<16x128xf32>
    %c0_19 = arith.constant 0 : index
    %c0_20 = arith.constant 0 : index
    %34 = vector.load %arg8[%c0_19, %c0_20] : memref<16x128xf32, #tpu.memory_space<vmem>>, vector<16x128xf32>
    tpu.vector_store %arg8[%c0_19, %c0_20], %33 {strides = array<i32>} : memref<16x128xf32, #tpu.memory_space<vmem>>, vector<16x128xf32>,
    return
  }
  func.func @transform_0(%arg0: i32) -> (i32, i32) {
    %c0_i32 = arith.constant 0 : i32
    %c0_i32_0 = arith.constant 0 : i32
    return %arg0, %c0_i32 : i32, i32
  }
  func.func @transform_1(%arg0: i32) -> (i32, i32) {
    %c0_i32 = arith.constant 0 : i32
    %c0_i32_0 = arith.constant 0 : i32
    %c0_i32_1 = arith.constant 0 : i32
    return %c0_i32, %c0_i32_0 : i32, i32
  }
  func.func @transform_2(%arg0: i32) -> (i32, i32) {
    %c0_i32 = arith.constant 0 : i32
    %c0_i32_0 = arith.constant 0 : i32
    %c0_i32_1 = arith.constant 0 : i32
    return %c0_i32, %c0_i32_0 : i32, i32
  }
  func.func @transform_3(%arg0: i32) -> (i32, i32) {
    %c0_i32 = arith.constant 0 : i32
    %c0_i32_0 = arith.constant 0 : i32
    %c0_i32_1 = arith.constant 0 : i32
    return %c0_i32, %c0_i32_0 : i32, i32
  }
  func.func @transform_4(%arg0: i32) -> (i32, i32) {
    %c0_i32 = arith.constant 0 : i32
    %c0_i32_0 = arith.constant 0 : i32
    %c0_i32_1 = arith.constant 0 : i32
    return %c0_i32, %c0_i32_0 : i32, i32
  }
  func.func @transform_5(%arg0: i32) -> (i32, i32) {
    %c0_i32 = arith.constant 0 : i32
    %c0_i32_0 = arith.constant 0 : i32
    %c0_i32_1 = arith.constant 0 : i32
    return %c0_i32, %c0_i32_0 : i32, i32
  }
  func.func @transform_6(%arg0: i32) -> (i32, i32) {
    %c0_i32 = arith.constant 0 : i32
    %c0_i32_0 = arith.constant 0 : i32
    %c0_i32_1 = arith.constant 0 : i32
    return %c0_i32, %c0_i32_0 : i32, i32
  }
  func.func @transform_7(%arg0: i32) -> (i32, i32) {
    %c0_i32 = arith.constant 0 : i32
    %c0_i32_0 = arith.constant 0 : i32
    return %arg0, %c0_i32 : i32, i32
  }
}

module attributes {stable_mosaic.version = 11 : i64} {
  func.func @_encoder_kernel(%arg0: i32, %arg1: memref<16x1024xbf16, #tpu.memory_space<vmem>>, %arg2: memref<1024x128xbf16, #tpu.memory_space<vmem>>, %arg3: memref<1x128xf32, #tpu.memory_space<vmem>>, %arg4: memref<128x128xbf16, #tpu.memory_space<vmem>>, %arg5: memref<1x128xf32, #tpu.memory_space<vmem>>, %arg6: memref<128x128xbf16, #tpu.memory_space<vmem>>, %arg7: memref<1x128xf32, #tpu.memory_space<vmem>>, %arg8: memref<16x128xf32, #tpu.memory_space<vmem>>) attributes {dimension_semantics = [#tpu.dimension_semantics<parallel>], iteration_bounds = array<i64: 1>, scalar_prefetch = 0 : i64, scratch_operands = 0 : i64, tpu.core_type = #tpu.core_type<tc>, window_params = [{transform_indices = @transform_0, window_bounds = array<i64: 16, 1024>}, {pipeline_mode = #tpu.pipeline_mode<synchronous>, transform_indices = @transform_1, window_bounds = array<i64: 1024, 128>}, {pipeline_mode = #tpu.pipeline_mode<synchronous>, transform_indices = @transform_2, window_bounds = array<i64: 1, 128>}, {pipeline_mode = #tpu.pipeline_mode<synchronous>, transform_indices = @transform_3, window_bounds = array<i64: 128, 128>}, {pipeline_mode = #tpu.pipeline_mode<synchronous>, transform_indices = @transform_4, window_bounds = array<i64: 1, 128>}, {pipeline_mode = #tpu.pipeline_mode<synchronous>, transform_indices = @transform_5, window_bounds = array<i64: 128, 128>}, {pipeline_mode = #tpu.pipeline_mode<synchronous>, transform_indices = @transform_6, window_bounds = array<i64: 1, 128>}, {transform_indices = @transform_7, window_bounds = array<i64: 16, 128>}]} {
    %c0 = arith.constant 0 : index
    %c0_0 = arith.constant 0 : index
    %0 = vector.load %arg1[%c0, %c0_0] : memref<16x1024xbf16, #tpu.memory_space<vmem>>, vector<16x1024xbf16>
    %c0_1 = arith.constant 0 : index
    %c0_2 = arith.constant 0 : index
    %1 = vector.load %arg2[%c0_1, %c0_2] : memref<1024x128xbf16, #tpu.memory_space<vmem>>, vector<1024x128xbf16>
    %cst = arith.constant dense<0.000000e+00> : vector<16x128xf32>
    %2 = tpu.matmul %0, %1, %cst {dimension_numbers = #tpu.dot_dimension_numbers<[1], [0], [0], [1], [0, 0, 1, 1], [], []>} : vector<16x1024xbf16>, vector<1024x128xbf16>, vector<16x128xf32> -> vector<16x128xf32>
    %c0_3 = arith.constant 0 : index
    %c0_4 = arith.constant 0 : index
    %3 = vector.load %arg3[%c0_3, %c0_4] : memref<1x128xf32, #tpu.memory_space<vmem>>, vector<1x128xf32>
    %4 = vector.broadcast %3 : vector<1x128xf32> to vector<16x128xf32>
    %5 = arith.addf %2, %4 : vector<16x128xf32>
    %cst_5 = arith.constant 0.000000e+00 : f32
    %6 = vector.broadcast %cst_5 : f32 to vector<16x128xf32>
    %7 = arith.cmpf oge, %5, %6 : vector<16x128xf32>
    %cst_6 = arith.constant 0.00999999977 : f32
    %8 = vector.broadcast %cst_6 : f32 to vector<16x128xf32>
    %9 = arith.mulf %8, %5 : vector<16x128xf32>
    %10 = arith.select %7, %5, %9 : vector<16x128xi1>, vector<16x128xf32>
    %11 = arith.truncf %10 : vector<16x128xf32> to vector<16x128xbf16>
    %c0_7 = arith.constant 0 : index
    %c0_8 = arith.constant 0 : index
    %12 = vector.load %arg4[%c0_7, %c0_8] : memref<128x128xbf16, #tpu.memory_space<vmem>>, vector<128x128xbf16>
    %cst_9 = arith.constant dense<0.000000e+00> : vector<16x128xf32>
    %13 = tpu.matmul %11, %12, %cst_9 {dimension_numbers = #tpu.dot_dimension_numbers<[1], [0], [0], [1], [0, 0, 1, 1], [], []>} : vector<16x128xbf16>, vector<128x128xbf16>, vector<16x128xf32> -> vector<16x128xf32>
    %c0_10 = arith.constant 0 : index
    %c0_11 = arith.constant 0 : index
    %14 = vector.load %arg5[%c0_10, %c0_11] : memref<1x128xf32, #tpu.memory_space<vmem>>, vector<1x128xf32>
    %15 = vector.broadcast %14 : vector<1x128xf32> to vector<16x128xf32>
    %16 = arith.addf %13, %15 : vector<16x128xf32>
    %17 = arith.addf %16, %10 : vector<16x128xf32>
    %cst_12 = arith.constant 0.000000e+00 : f32
    %18 = vector.broadcast %cst_12 : f32 to vector<16x128xf32>
    %19 = arith.cmpf oge, %17, %18 : vector<16x128xf32>
    %cst_13 = arith.constant 0.00999999977 : f32
    %20 = vector.broadcast %cst_13 : f32 to vector<16x128xf32>
    %21 = arith.mulf %20, %17 : vector<16x128xf32>
    %22 = arith.select %19, %17, %21 : vector<16x128xi1>, vector<16x128xf32>
    %23 = arith.truncf %22 : vector<16x128xf32> to vector<16x128xbf16>
    %c0_14 = arith.constant 0 : index
    %c0_15 = arith.constant 0 : index
    %24 = vector.load %arg6[%c0_14, %c0_15] : memref<128x128xbf16, #tpu.memory_space<vmem>>, vector<128x128xbf16>
    %cst_16 = arith.constant dense<0.000000e+00> : vector<16x128xf32>
    %25 = tpu.matmul %23, %24, %cst_16 {dimension_numbers = #tpu.dot_dimension_numbers<[1], [0], [0], [1], [0, 0, 1, 1], [], []>} : vector<16x128xbf16>, vector<128x128xbf16>, vector<16x128xf32> -> vector<16x128xf32>
    %c0_17 = arith.constant 0 : index
    %c0_18 = arith.constant 0 : index
    %26 = vector.load %arg7[%c0_17, %c0_18] : memref<1x128xf32, #tpu.memory_space<vmem>>, vector<1x128xf32>
    %27 = vector.broadcast %26 : vector<1x128xf32> to vector<16x128xf32>
    %28 = arith.addf %25, %27 : vector<16x128xf32>
    %29 = tpu.iota {dimensions = array<i32: 1>} : vector<16x128xi32>
    %c16_i32 = arith.constant 16 : i32
    %30 = vector.broadcast %c16_i32 : i32 to vector<16x128xi32>
    %31 = arith.cmpi sge, %29, %30 : vector<16x128xi32>
    %32 = math.exp %28 : vector<16x128xf32>
    %33 = arith.select %31, %32, %28 : vector<16x128xi1>, vector<16x128xf32>
    %c0_19 = arith.constant 0 : index
    %c0_20 = arith.constant 0 : index
    %34 = vector.load %arg8[%c0_19, %c0_20] : memref<16x128xf32, #tpu.memory_space<vmem>>, vector<16x128xf32>
    tpu.vector_store %arg8[%c0_19, %c0_20], %33 {strides = array<i32>} : memref<16x128xf32, #tpu.memory_space<vmem>>, vector<16x128xf32>,
    return
  }
  func.func @transform_0(%arg0: i32) -> (i32, i32) {
    %c0_i32 = arith.constant 0 : i32
    %c0_i32_0 = arith.constant 0 : i32
    return %arg0, %c0_i32 : i32, i32
  }
  func.func @transform_1(%arg0: i32) -> (i32, i32) {
    %c0_i32 = arith.constant 0 : i32
    %c0_i32_0 = arith.constant 0 : i32
    %c0_i32_1 = arith.constant 0 : i32
    return %c0_i32, %c0_i32_0 : i32, i32
  }
  func.func @transform_2(%arg0: i32) -> (i32, i32) {
    %c0_i32 = arith.constant 0 : i32
    %c0_i32_0 = arith.constant 0 : i32
    %c0_i32_1 = arith.constant 0 : i32
    return %c0_i32, %c0_i32_0 : i32, i32
  }
  func.func @transform_3(%arg0: i32) -> (i32, i32) {
    %c0_i32 = arith.constant 0 : i32
    %c0_i32_0 = arith.constant 0 : i32
    %c0_i32_1 = arith.constant 0 : i32
    return %c0_i32, %c0_i32_0 : i32, i32
  }
  func.func @transform_4(%arg0: i32) -> (i32, i32) {
    %c0_i32 = arith.constant 0 : i32
    %c0_i32_0 = arith.constant 0 : i32
    %c0_i32_1 = arith.constant 0 : i32
    return %c0_i32, %c0_i32_0 : i32, i32
  }
  func.func @transform_5(%arg0: i32) -> (i32, i32) {
    %c0_i32 = arith.constant 0 : i32
    %c0_i32_0 = arith.constant 0 : i32
    %c0_i32_1 = arith.constant 0 : i32
    return %c0_i32, %c0_i32_0 : i32, i32
  }
  func.func @transform_6(%arg0: i32) -> (i32, i32) {
    %c0_i32 = arith.constant 0 : i32
    %c0_i32_0 = arith.constant 0 : i32
    %c0_i32_1 = arith.constant 0 : i32
    return %c0_i32, %c0_i32_0 : i32, i32
  }
  func.func @transform_7(%arg0: i32) -> (i32, i32) {
    %c0_i32 = arith.constant 0 : i32
    %c0_i32_0 = arith.constant 0 : i32
    return %arg0, %c0_i32 : i32, i32
  }
}

</mosaic_0001>

<bundles_post_ra>
// kernel: tpu_custom_call.1
= control target key start
LH: loop header
LB: loop body
LE: loop exit
PB: predicated region body
PF: predicated region fallthrough
CT: control target
= control target key end

     0   :  { %12 = vsyncpa [#allocation3], 0  ;;  %s1639_s0 = inlined_call_operand.hbm [shape: bf16[16,1024], index: 0, kind: input, shape index: {}]   ;;  %s1640_s1 = inlined_call_operand.hbm [shape: bf16[1024,128], index: 1, kind: input, shape index: {}]   ;;  %s1641_s2 = inlined_call_operand.vmem [shape: f32[1,128], index: 2, kind: input, shape index: {}]   ;;  %s1642_s3 = inlined_call_operand.hbm [shape: bf16[128,128], index: 3, kind: input, shape index: {}]   ;;  %s1643_s4 = inlined_call_operand.vmem [shape: f32[1,128], index: 4, kind: input, shape index: {}]   ;;  %s1644_s5 = inlined_call_operand.hbm [shape: bf16[128,128], index: 5, kind: input, shape index: {}]   ;;  %s1645_s6 = inlined_call_operand.vmem [shape: f32[1,128], index: 6, kind: input, shape index: {}]   ;;  %s1646_s7 = inlined_call_operand.hbm [shape: f32[16,128], index: 7, kind: output, shape index: {}]  }
   0x1   :  { %13 = vsyncpa [#allocation6], 0 }
   0x2   :  { %14 = vsyncpa [#allocation9], 0  ;;  %s33_s26 = sshll.u32 %s1640_s1, 4  ;;  %s34_s26 = int_to_ptr.hbm [resolvable:$true] %s33_s26 }
   0x3   :  { %15 = vsyncpa [#allocation4], 0  ;;  %s1564_s27 = smov [#allocation5]   ;;  %s20_s8 = sshll.u32 %s1639_s0, 4  ;;  %s21_s8 = int_to_ptr.hbm [resolvable:$true] %s20_s8 }
   0x4   :  { %s35_s28 = sshll.u32 %s1564_s27, 4  ;;  %s1565_s9 = smov 64   ;;  %s36_s28 = int_to_ptr.vmem [resolvable:$true] %s35_s28 }
   0x5   :  { %s1566_s10 = smov 4   ;;  %s1567_s11 = smov [#allocation2]  }
   0x6   :  { %41 = dma.hbm_to_vmem [thread:$0]  %s34_s26, 8192, %s36_s28, [#allocation6], %s1565_s9, %s1565_s9, %s1566_s10  }
   0x7   :  { %s22_s12 = sshll.u32 %s1567_s11, 4  ;;  %s1568_s13 = smov 512   ;;  %s23_s12 = int_to_ptr.vmem [resolvable:$true] %s22_s12 }
   0x8   :  { %s1569_s14 = smov 32   ;;  %s48_s16 = sshll.u32 %s1642_s3, 4  ;;  %s49_s16 = int_to_ptr.hbm [resolvable:$true] %s48_s16 }
   0x9   :  { %28 = dma.hbm_to_vmem [thread:$0]  %s21_s8, 1024, %s23_s12, [#allocation3], %s1568_s13, %s1568_s13, %s1569_s14  }
   0xa   :  { %s1570_s17 = smov [#allocation7]   ;;  %s63_s20 = sshll.u32 %s1644_s5, 4  ;;  %s64_s20 = int_to_ptr.hbm [resolvable:$true] %s63_s20 }
   0xb   :  { %s50_s18 = sshll.u32 %s1570_s17, 4  ;;  %s1571_s21 = smov [#allocation8]   ;;  %s51_s18 = int_to_ptr.vmem [resolvable:$true] %s50_s18 }
   0xc   :  { %56 = dma.hbm_to_vmem [thread:$0]  %s49_s16, 1024, %s51_s18, [#allocation6], %s1565_s9, %s1565_s9, %s1566_s10  }
   0xd   :  { %s65_s22 = sshll.u32 %s1571_s21, 4  ;;  %s66_s22 = int_to_ptr.vmem [resolvable:$true] %s65_s22 }
   0xe   :  { %71 = dma.hbm_to_vmem [thread:$0]  %s64_s20, 1024, %s66_s22, [#allocation9], %s1565_s9, %s1565_s9, %s1566_s10  }
   0xf   :  { %1556 = dma.done.wait [#allocation3], 1024  }
  0x10   :  { %1557 = vsyncadd [#allocation3], 4294966272 }
  0x11   :  { %1558 = dma.done.wait [#allocation6], 9216  }
  0x12   :  { %1559 = vsyncadd [#allocation6], 4294958080 }
  0x13   :  { %1560 = dma.done.wait [#allocation9], 1024  }
  0x14   :  { %1561 = vsyncadd [#allocation9], 4294966272  ;;  %v1345_v0 = vld [vmem:[#allocation5 + $0x38] sm:$0xff]  ;;  %v1344_v4 = vld [vmem:[#allocation5 + $0x30] sm:$0xff]  ;;  %s1573_s29 = smov 128   ;;  %s1574_s30 = smov 8  }
  0x15   :  { %v1353_v1 = vld [vmem:[#allocation5 + $0x78] sm:$0xff]  ;;  %654 = vmatpush.bf16.msra.mxu0 %v1345_v0  ;;  %v1352_v5 = vld [vmem:[#allocation5 + $0x70] sm:$0xff]  ;;  %v1343_v8 = vld [vmem:[#allocation5 + $0x28] sm:$0xff] }
  0x16   :  { %v1361_v2 = vld [vmem:[#allocation5 + $0xb8] sm:$0xff]  ;;  %668 = vmatpush.bf16.msra.mxu1 %v1353_v1  ;;  %v1360_v6 = vld [vmem:[#allocation5 + $0xb0] sm:$0xff]  ;;  %v1351_v9 = vld [vmem:[#allocation5 + $0x68] sm:$0xff] }
  0x17   :  { %v1369_v3 = vld [vmem:[#allocation5 + $0xf8] sm:$0xff]  ;;  %682 = vmatpush.bf16.msra.mxu2 %v1361_v2  ;;  %v1368_v7 = vld [vmem:[#allocation5 + $0xf0] sm:$0xff]  ;;  %v1359_v10 = vld [vmem:[#allocation5 + $0xa8] sm:$0xff] }
  0x18   :  { %696 = vmatpush.bf16.msra.mxu3 %v1369_v3  ;;  %v1367_v11 = vld [vmem:[#allocation5 + $0xe8] sm:$0xff]  ;;  %v1342_v12 = vld [vmem:[#allocation5 + $0x20] sm:$0xff]  ;;  %v1341_v16 = vld [vmem:[#allocation5 + $0x18] sm:$0xff] }
  0x19   :  { %655 = vmatpush.bf16.msra.mxu0 %v1344_v4  ;;  %v1350_v13 = vld [vmem:[#allocation5 + $0x60] sm:$0xff]  ;;  %v1349_v17 = vld [vmem:[#allocation5 + $0x58] sm:$0xff]  ;;  %v1340_v20 = vld [vmem:[#allocation5 + $0x10] sm:$0xff] }
  0x1a   :  { %669 = vmatpush.bf16.msra.mxu1 %v1352_v5  ;;  %v1358_v14 = vld [vmem:[#allocation5 + $0xa0] sm:$0xff]  ;;  %v1357_v18 = vld [vmem:[#allocation5 + $0x98] sm:$0xff]  ;;  %v1348_v21 = vld [vmem:[#allocation5 + $0x50] sm:$0xff] }
  0x1b   :  { %683 = vmatpush.bf16.msra.mxu2 %v1360_v6  ;;  %v1366_v15 = vld [vmem:[#allocation5 + $0xe0] sm:$0xff]  ;;  %v1365_v19 = vld [vmem:[#allocation5 + $0xd8] sm:$0xff]  ;;  %v1356_v22 = vld [vmem:[#allocation5 + $0x90] sm:$0xff] }
  0x1c   :  { %697 = vmatpush.bf16.msra.mxu3 %v1368_v7  ;;  %v1364_v23 = vld [vmem:[#allocation5 + $0xd0] sm:$0xff]  ;;  %v1339_v24 = vld [vmem:[#allocation5 + $0x8] sm:$0xff]  ;;  %v1338_v28 = vld [vmem:[#allocation5] sm:$0xff] }
  0x1d   :  { %656 = vmatpush.bf16.msra.mxu0 %v1343_v8  ;;  %v1347_v25 = vld [vmem:[#allocation5 + $0x48] sm:$0xff]  ;;  %v1346_v29 = vld [vmem:[#allocation5 + $0x40] sm:$0xff]  ;;  %v1377_v32 = vld [vmem:[#allocation5 + $0x138] sm:$0xff] }
  0x1e   :  { %670 = vmatpush.bf16.msra.mxu1 %v1351_v9  ;;  %v1355_v26 = vld [vmem:[#allocation5 + $0x88] sm:$0xff]  ;;  %v1354_v30 = vld [vmem:[#allocation5 + $0x80] sm:$0xff]  ;;  %v1385_v33 = vld [vmem:[#allocation5 + $0x178] sm:$0xff] }
  0x1f   :  { %684 = vmatpush.bf16.msra.mxu2 %v1359_v10  ;;  %v1363_v27 = vld [vmem:[#allocation5 + $0xc8] sm:$0xff]  ;;  %v1362_v31 = vld [vmem:[#allocation5 + $0xc0] sm:$0xff]  ;;  %v1393_v42 = vld [vmem:[#allocation5 + $0x1b8] sm:$0xff] }
  0x20   :  { %698 = vmatpush.bf16.msra.mxu3 %v1367_v11  ;;  %v988_v34 = vld [vmem:[#allocation2 + $0x8] sm:$0xf]  ;;  %v980_v36 = vld [vmem:[#allocation2] sm:$0xf]  ;;  %v1331_v38 = vld [vmem:[#allocation2 + $0xc] sm:$0xf] }
  0x21   :  { %657 = vmatpush.bf16.msra.mxu0 %v1342_v12  ;;  %v1335_v35 = vld [vmem:[#allocation2 + $0x24] sm:$0xf0]  ;;  %v1334_v37 = vld [vmem:[#allocation2 + $0x1c] sm:$0xf0]  ;;  %v990_v39 = vld [vmem:[#allocation2 + $0x28] sm:$0xf0] }
  0x22   :  { %671 = vmatpush.bf16.msra.mxu1 %v1350_v13  ;;  %v1330_v40 = vld [vmem:[#allocation2 + $0x4] sm:$0xf]  ;;  %v1401_v43 = vld [vmem:[#allocation5 + $0x1f8] sm:$0xff]  ;;  %v989_v44 = vor.u32 %v1335_v35, %v988_v34  ;;  %v981_v45 = vor.u32 %v1334_v37, %v980_v36  ;;  %v993_v46 = vor.u32 %v1331_v38, %v990_v39  ;;  %v1376_v48 = vld [vmem:[#allocation5 + $0x130] sm:$0xff] }
  0x23   :  { %685 = vmatpush.bf16.msra.mxu2 %v1358_v14  ;;  %v982_v41 = vld [vmem:[#allocation2 + $0x20] sm:$0xf0]  ;;  %v1384_v49 = vld [vmem:[#allocation5 + $0x170] sm:$0xff]  ;;  %v1375_v52 = vld [vmem:[#allocation5 + $0x128] sm:$0xff] }
  0x24   :  { %699 = vmatpush.bf16.msra.mxu3 %v1366_v15  ;;  %v985_v47 = vor.u32 %v1330_v40, %v982_v41  ;;  %v1392_v50 = vld [vmem:[#allocation5 + $0x1b0] sm:$0xff]  ;;  %v1383_v53 = vld [vmem:[#allocation5 + $0x168] sm:$0xff]  ;;  %v1374_v56 = vld [vmem:[#allocation5 + $0x120] sm:$0xff] }
  0x25   :  { %658 = vmatpush.bf16.msra.mxu0 %v1341_v16  ;;  %v1400_v51 = vld [vmem:[#allocation5 + $0x1f0] sm:$0xff]  ;;  %v1391_v54 = vld [vmem:[#allocation5 + $0x1a8] sm:$0xff]  ;;  %v1382_v57 = vld [vmem:[#allocation5 + $0x160] sm:$0xff] }
  0x26   :  { %672 = vmatpush.bf16.msra.mxu1 %v1349_v17  ;;  %v1399_v55 = vld [vmem:[#allocation5 + $0x1e8] sm:$0xff]  ;;  %v1390_v58 = vld [vmem:[#allocation5 + $0x1a0] sm:$0xff]  ;;  %v1373_v60 = vld [vmem:[#allocation5 + $0x118] sm:$0xff] }
  0x27   :  { %686 = vmatpush.bf16.msra.mxu2 %v1357_v18  ;;  %v1398_v59 = vld [vmem:[#allocation5 + $0x1e0] sm:$0xff]  ;;  %v1381_v61 = vld [vmem:[#allocation5 + $0x158] sm:$0xff]  ;;  %v1372_v0 = vld [vmem:[#allocation5 + $0x110] sm:$0xff] }
  0x28   :  { %700 = vmatpush.bf16.msra.mxu3 %v1365_v19  ;;  %v1389_v62 = vld [vmem:[#allocation5 + $0x198] sm:$0xff]  ;;  %v1380_v1 = vld [vmem:[#allocation5 + $0x150] sm:$0xff]  ;;  %v1371_v4 = vld [vmem:[#allocation5 + $0x108] sm:$0xff] }
  0x29   :  { %659 = vmatpush.bf16.msra.mxu0 %v1340_v20  ;;  %v1397_v63 = vld [vmem:[#allocation5 + $0x1d8] sm:$0xff]  ;;  %v1388_v2 = vld [vmem:[#allocation5 + $0x190] sm:$0xff]  ;;  %v1379_v5 = vld [vmem:[#allocation5 + $0x148] sm:$0xff] }
  0x2a   :  { %673 = vmatpush.bf16.msra.mxu1 %v1348_v21  ;;  %v1396_v3 = vld [vmem:[#allocation5 + $0x1d0] sm:$0xff]  ;;  %v1387_v6 = vld [vmem:[#allocation5 + $0x188] sm:$0xff]  ;;  %v1370_v8 = vld [vmem:[#allocation5 + $0x100] sm:$0xff] }
  0x2b   :  { %687 = vmatpush.bf16.msra.mxu2 %v1356_v22  ;;  %v1395_v7 = vld [vmem:[#allocation5 + $0x1c8] sm:$0xff]  ;;  %v1378_v9 = vld [vmem:[#allocation5 + $0x140] sm:$0xff]  ;;  %v996_v12 = vld [vmem:[#allocation2 + $0x10] sm:$0xf] }
  0x2c   :  { %701 = vmatpush.bf16.msra.mxu3 %v1364_v23  ;;  %v1386_v10 = vld [vmem:[#allocation5 + $0x180] sm:$0xff]  ;;  %v1336_v13 = vld [vmem:[#allocation2 + $0x2c] sm:$0xf0]  ;;  %v1332_v14 = vld [vmem:[#allocation2 + $0x14] sm:$0xf] }
  0x2d   :  { %660 = vmatpush.bf16.msra.mxu0 %v1339_v24  ;;  %v1394_v11 = vld [vmem:[#allocation5 + $0x1c0] sm:$0xff]  ;;  %v998_v15 = vld [vmem:[#allocation2 + $0x30] sm:$0xf0]  ;;  %v1004_v16 = vld [vmem:[#allocation2 + $0x18] sm:$0xf]  ;;  %v997_v20 = vor.u32 %v1336_v13, %v996_v12 }
  0x2e   :  { %674 = vmatpush.bf16.msra.mxu1 %v1347_v25  ;;  %v1337_v17 = vld [vmem:[#allocation2 + $0x34] sm:$0xf0]  ;;  %v1333_v18 = vld [vmem:[#allocation2 + $0x1c] sm:$0xf]  ;;  %v1001_v21 = vor.u32 %v1332_v14, %v998_v15  ;;  %v1408_v25 = vld [vmem:[#allocation7 + $0x30] sm:$0xff] }
  0x2f   :  { %688 = vmatpush.bf16.msra.mxu2 %v1355_v26  ;;  %v1006_v19 = vld [vmem:[#allocation2 + $0x38] sm:$0xf0]  ;;  %v1005_v22 = vor.u32 %v1337_v17, %v1004_v16  ;;  %v1407_v26 = vld [vmem:[#allocation7 + $0x28] sm:$0xff]  ;;  %v1402_v34 = vld [vmem:[#allocation7] sm:$0xff] }
  0x30   :  { %702 = vmatpush.bf16.msra.mxu3 %v1363_v27  ;;  %v1009_v23 = vor.u32 %v1333_v18, %v1006_v19  ;;  %v1409_v24 = vld [vmem:[#allocation7 + $0x38] sm:$0xff]  ;;  %v1406_v27 = vld [vmem:[#allocation7 + $0x20] sm:$0xff]  ;;  %v1411_v12 = vld [vmem:[#allocation8 + $0x8] sm:$0xff] }
  0x31   :  { %661 = vmatpush.bf16.msra.mxu0 %v1338_v28  ;;  %v1405_v28 = vld [vmem:[#allocation7 + $0x18] sm:$0xff]  ;;  %v1410_v13 = vld [vmem:[#allocation8] sm:$0xff] }
  0x32   :  { %675 = vmatpush.bf16.msra.mxu1 %v1346_v29  ;;  %v1404_v29 = vld [vmem:[#allocation7 + $0x10] sm:$0xff]  ;;  %v1417_v39 = vld [vmem:[#allocation8 + $0x38] sm:$0xff]  ;;  %v1430_v14 = vld [vmem:[%s1643_s4] ss:$0 sm:$0xff]  ;;  %s1572_s4 = smov [#allocation10]  }
  0x33   :  { %689 = vmatpush.bf16.msra.mxu2 %v1354_v30  ;;  %s961_s26 = sshll.u32 %s1572_s4, 4  ;;  %s962_s26 = int_to_ptr.vmem [resolvable:$true] %s961_s26 }
  0x34   :  { %703 = vmatpush.bf16.msra.mxu3 %v1362_v31  ;;  %662 = vmatmul.bf16.vlgmr.msra.gmra.mxu0 %v981_v45  ;;  %v1403_v31 = vld [vmem:[#allocation7 + $0x8] sm:$0xff] }
  0x35   :  { %710 = vmatpush.bf16.msrb.mxu0 %v1377_v32  ;;  %676 = vmatmul.bf16.vlgmr.msra.gmra.mxu1 %v985_v47  ;;  %v1415_v47 = vld [vmem:[#allocation8 + $0x28] sm:$0xff] }
  0x36   :  { %724 = vmatpush.bf16.msrb.mxu1 %v1385_v33  ;;  %690 = vmatmul.bf16.vlgmr.msra.gmra.mxu2 %v989_v44  ;;  %v1429_v33 = vld [vmem:[%s1641_s2] ss:$0 sm:$0xff] }
  0x37   :  { %738 = vmatpush.bf16.msrb.mxu2 %v1393_v42  ;;  %704 = vmatmul.bf16.vlgmr.msra.gmra.mxu3 %v993_v46  ;;  %v1416_v42 = vld [vmem:[#allocation8 + $0x30] sm:$0xff] }
  0x38   :  { %752 = vmatpush.bf16.msrb.mxu3 %v1401_v43 }
  0x39   :  { %711 = vmatpush.bf16.msrb.mxu0 %v1376_v48 }
  0x3a   :  { %725 = vmatpush.bf16.msrb.mxu1 %v1384_v49 }
  0x3b   :  { %739 = vmatpush.bf16.msrb.mxu2 %v1392_v50 }
  0x3c   :  { %753 = vmatpush.bf16.msrb.mxu3 %v1400_v51 }
  0x3d   :  { %712 = vmatpush.bf16.msrb.mxu0 %v1375_v52  ;;  %v1414_v52 = vld [vmem:[#allocation8 + $0x20] sm:$0xff] }
  0x3e   :  { %726 = vmatpush.bf16.msrb.mxu1 %v1383_v53 }
  0x3f   :  { %740 = vmatpush.bf16.msrb.mxu2 %v1391_v54 }
  0x40   :  { %754 = vmatpush.bf16.msrb.mxu3 %v1399_v55 }
  0x41   :  { %713 = vmatpush.bf16.msrb.mxu0 %v1374_v56 }
  0x42   :  { %727 = vmatpush.bf16.msrb.mxu1 %v1382_v57 }
  0x43   :  { %741 = vmatpush.bf16.msrb.mxu2 %v1390_v58 }
  0x44   :  { %755 = vmatpush.bf16.msrb.mxu3 %v1398_v59 }
  0x45   :  { %714 = vmatpush.bf16.msrb.mxu0 %v1373_v60 }
  0x46   :  { %728 = vmatpush.bf16.msrb.mxu1 %v1381_v61 }
  0x47   :  { %742 = vmatpush.bf16.msrb.mxu2 %v1389_v62 }
  0x48   :  { %756 = vmatpush.bf16.msrb.mxu3 %v1397_v63 }
  0x49   :  { %715 = vmatpush.bf16.msrb.mxu0 %v1372_v0 }
  0x4a   :  { %729 = vmatpush.bf16.msrb.mxu1 %v1380_v1 }
  0x4b   :  { %743 = vmatpush.bf16.msrb.mxu2 %v1388_v2 }
  0x4c   :  { %757 = vmatpush.bf16.msrb.mxu3 %v1396_v3 }
  0x4d   :  { %716 = vmatpush.bf16.msrb.mxu0 %v1371_v4 }
  0x4e   :  { %730 = vmatpush.bf16.msrb.mxu1 %v1379_v5 }
  0x4f   :  { %744 = vmatpush.bf16.msrb.mxu2 %v1387_v6 }
  0x50   :  { %758 = vmatpush.bf16.msrb.mxu3 %v1395_v7 }
  0x51   :  { %717 = vmatpush.bf16.msrb.mxu0 %v1370_v8 }
  0x52   :  { %731 = vmatpush.bf16.msrb.mxu1 %v1378_v9 }
  0x53   :  { %745 = vmatpush.bf16.msrb.mxu2 %v1386_v10  ;;  %v1413_v10 = vld [vmem:[#allocation8 + $0x18] sm:$0xff] }
  0x54   :  { %759 = vmatpush.bf16.msrb.mxu3 %v1394_v11  ;;  %718 = vmatmul.bf16.vlgmr.msrb.gmra.mxu0 %v997_v20  ;;  %v1412_v11 = vld [vmem:[#allocation8 + $0x10] sm:$0xff] }
  0x55   :  { %732 = vmatmul.bf16.vlgmr.msrb.gmra.mxu1 %v1001_v21  ;;  %841 = vmatpush.bf16.msra.mxu0 %v1409_v24 }
  0x56   :  { %746 = vmatmul.bf16.vlgmr.msrb.gmra.mxu2 %v1005_v22  ;;  %932 = vmatpush.bf16.msra.mxu1 %v1417_v39 }
  0x57   :  { %760 = vmatmul.bf16.vlgmr.msrb.gmra.mxu3 %v1009_v23 }
  0x59   :  { %842 = vmatpush.bf16.msra.mxu0 %v1408_v25 }
  0x5a   :  { %933 = vmatpush.bf16.msra.mxu1 %v1416_v42 }
  0x5d   :  { %843 = vmatpush.bf16.msra.mxu0 %v1407_v26  ;;  %v1431_v26 = vld [vmem:[%s1645_s6] ss:$0 sm:$0xff]  ;;  %s963_s6 = sshll.u32 %s1646_s7, 4  ;;  %s964_s6 = int_to_ptr.hbm [resolvable:$true] %s963_s6 }
  0x5e   :  { %934 = vmatpush.bf16.msra.mxu1 %v1415_v47 }
  0x61   :  { %844 = vmatpush.bf16.msra.mxu0 %v1406_v27 }
  0x62   :  { %935 = vmatpush.bf16.msra.mxu1 %v1414_v52 }
  0x65   :  { %845 = vmatpush.bf16.msra.mxu0 %v1405_v28 }
  0x66   :  { %936 = vmatpush.bf16.msra.mxu1 %v1413_v10 }
  0x69   :  { %846 = vmatpush.bf16.msra.mxu0 %v1404_v29  ;;  %v946_v29 = vlaneseq }
  0x6a   :  { %937 = vmatpush.bf16.msra.mxu1 %v1412_v11 }
  0x6d   :  { %847 = vmatpush.bf16.msra.mxu0 %v1403_v31  ;;  %v947_v31 = vand.u32 127, %v946_v29 }
  0x6e   :  { %938 = vmatpush.bf16.msra.mxu1 %v1411_v12 }
  0x6f   :  { %vm948_vm4 = vcmp.ge.s32.totalorder %v947_v31, 16 }
  0x71   :  { %848 = vmatpush.bf16.msra.mxu0 %v1402_v34 }
  0x72   :  { %939 = vmatpush.bf16.msra.mxu1 %v1410_v13 }
  0xb1   :  { %v663_v30 = vpop.f32.mrf.mxu0 }
  0xb2   :  { %v677_v32 = vpop.f32.mrf.mxu1  ;;  %v664_v37 = vadd.f32 %v1429_v33, %v663_v30 }
  0xb4   :  { %v678_v40 = vadd.f32 %v677_v32, %v664_v37 }
  0xb9   :  { %v691_v35 = vpop.f32.mrf.mxu2  ;;  %v665_v38 = vpop.f32.mrf.mxu0 }
  0xba   :  { %v705_v36 = vpop.f32.mrf.mxu3  ;;  %v679_v41 = vpop.f32.mrf.mxu1  ;;  %v666_v43 = vadd.f32 %v1429_v33, %v665_v38  ;;  %v692_v44 = vadd.f32 %v691_v35, %v678_v40 }
  0xbc   :  { %v680_v48 = vadd.f32 %v679_v41, %v666_v43  ;;  %v706_v50 = vadd.f32 %v705_v36, %v692_v44 }
  0xc1   :  { %v693_v45 = vpop.f32.mrf.mxu2 }
  0xc2   :  { %v707_v46 = vpop.f32.mrf.mxu3  ;;  %v694_v53 = vadd.f32 %v693_v45, %v680_v48 }
  0xc4   :  { %v708_v57 = vadd.f32 %v707_v46, %v694_v53 }
  0xd1   :  { %v719_v49 = vpop.f32.mrf.mxu0 }
  0xd2   :  { %v733_v51 = vpop.f32.mrf.mxu1  ;;  %v720_v54 = vadd.f32 %v719_v49, %v706_v50 }
  0xd4   :  { %v734_v58 = vadd.f32 %v733_v51, %v720_v54 }
  0xd9   :  { %v747_v55 = vpop.f32.mrf.mxu2  ;;  %v721_v59 = vpop.f32.mrf.mxu0 }
  0xda   :  { %v761_v56 = vpop.f32.mrf.mxu3  ;;  %v748_v60 = vadd.f32 %v747_v55, %v734_v58  ;;  %v722_v61 = vadd.f32 %v721_v59, %v708_v57  ;;  %v735_v62 = vpop.f32.mrf.mxu1 }
  0xdc   :  { %v762_v63 = vadd.f32 %v761_v56, %v748_v60  ;;  %v736_v0 = vadd.f32 %v735_v62, %v722_v61 }
  0xde   :  { %v768_v4 = vmul.f32 0.01, %v762_v63  ;;  %vm766_vm0 = vcmp.ge.f32.partialorder %v762_v63, 0.0 }
  0xe0   :  { %v770_v7 = vsel %vm766_vm0, %v762_v63, %v768_v4 }
  0xe1   :  { %v749_v1 = vpop.f32.mrf.mxu2 }
  0xe2   :  { %v750_v2 = vadd.f32 %v749_v1, %v736_v0  ;;  %v763_v3 = vpop.f32.mrf.mxu3 }
  0xe4   :  { %v764_v5 = vadd.f32 %v763_v3, %v750_v2 }
  0xe6   :  { %vm767_vm1 = vcmp.ge.f32.partialorder %v764_v5, 0.0  ;;  %v769_v6 = vmul.f32 0.01, %v764_v5 }
  0xe8   :  { %v771_v8 = vsel %vm767_vm1, %v764_v5, %v769_v6 }
  0xe9   :  { %v772_v9 = vpack.c.bf16 %v771_v8, %v770_v7 }
  0xeb   :  { %849 = vmatmul.bf16.vlgmr.msra.gmra.mxu0 %v772_v9 }
 0x168   :  { %v850_v15 = vpop.f32.mrf.mxu0 }
 0x169   :  { %v851_v16 = vadd.f32 %v1430_v14, %v850_v15 }
 0x16b   :  { %v855_v17 = vadd.f32 %v851_v16, %v770_v7 }
 0x16d   :  { %v859_v20 = vmul.f32 0.01, %v855_v17  ;;  %vm857_vm2 = vcmp.ge.f32.partialorder %v855_v17, 0.0 }
 0x16f   :  { %v861_v23 = vsel %vm857_vm2, %v855_v17, %v859_v20 }
 0x170   :  { %v852_v18 = vpop.f32.mrf.mxu0 }
 0x171   :  { %v853_v19 = vadd.f32 %v1430_v14, %v852_v18 }
 0x173   :  { %v856_v21 = vadd.f32 %v853_v19, %v771_v8 }
 0x175   :  { %vm858_vm3 = vcmp.ge.f32.partialorder %v856_v21, 0.0  ;;  %v860_v22 = vmul.f32 0.01, %v856_v21 }
 0x177   :  { %v862_v24 = vsel %vm858_vm3, %v856_v21, %v860_v22 }
 0x178   :  { %v863_v25 = vpack.c.bf16 %v862_v24, %v861_v23 }
 0x17a   :  { %940 = vmatmul.bf16.vlgmr.msra.gmra.mxu1 %v863_v25 }
 0x1f7   :  { %v941_v27 = vpop.f32.mrf.mxu1 }
 0x1f8   :  { %v942_v28 = vadd.f32 %v1431_v26, %v941_v27 }
 0x1fa   :  { %v949_v30 = vmul.f32 1.442695, %v942_v28 }
 0x1fc   :  { %1432 = vpow2.f32 %v949_v30 }
 0x1ff   :  { %v943_v32 = vpop.f32.mrf.mxu1 }
 0x200   :  { %v944_v33 = vadd.f32 %v1431_v26, %v943_v32 }
 0x202   :  { %v1433_v34 = vpop.eup %1432  ;;  %v951_v35 = vmul.f32 1.442695, %v944_v33 }
 0x203   :  { %v953_v36 = vsel %vm948_vm4, %v1433_v34, %v942_v28 }
 0x204   :  { %955 = vst [vmem:[#allocation10] sm:$0xff] %v953_v36  ;;  %1434 = vpow2.f32 %v951_v35 }
 0x20a   :  { %v1435_v37 = vpop.eup %1434 }
 0x20b   :  { %v954_v38 = vsel %vm948_vm4, %v1435_v37, %v944_v33 }
 0x20c   :  { %956 = vst [vmem:[#allocation10 + $0x8] sm:$0xff] %v954_v38 }
 0x20d   :  { %969 = dma.vmem_to_hbm [thread:$0]  %s962_s26, 256, %s964_s6, [#allocation4], %s1573_s29, %s1573_s29, %s1574_s30  }
 0x20e   :  { %1562 = dma.done.wait [#allocation4], 256  }
 0x20f   :  { %1563 = vsyncadd [#allocation4], 4294967040 }
 0x210   :  { %974 = vsyncpa [#allocation3], 1 }
 0x211   :  { %975 = vsyncpa [#allocation6], 1 }
 0x212   :  { %976 = vsyncpa [#allocation9], 1 }
 0x213   :  { %977 = vsyncpa [#allocation4], 1 }

// kernel: tpu_custom_call.1
= control target key start
LH: loop header
LB: loop body
LE: loop exit
PB: predicated region body
PF: predicated region fallthrough
CT: control target
= control target key end

     0   :  { %12 = vsyncpa [#allocation3], 0  ;;  %s1639_s0 = inlined_call_operand.hbm [shape: bf16[16,1024], index: 0, kind: input, shape index: {}]   ;;  %s1640_s1 = inlined_call_operand.hbm [shape: bf16[1024,128], index: 1, kind: input, shape index: {}]   ;;  %s1641_s2 = inlined_call_operand.vmem [shape: f32[1,128], index: 2, kind: input, shape index: {}]   ;;  %s1642_s3 = inlined_call_operand.hbm [shape: bf16[128,128], index: 3, kind: input, shape index: {}]   ;;  %s1643_s4 = inlined_call_operand.vmem [shape: f32[1,128], index: 4, kind: input, shape index: {}]   ;;  %s1644_s5 = inlined_call_operand.hbm [shape: bf16[128,128], index: 5, kind: input, shape index: {}]   ;;  %s1645_s6 = inlined_call_operand.vmem [shape: f32[1,128], index: 6, kind: input, shape index: {}]   ;;  %s1646_s7 = inlined_call_operand.hbm [shape: f32[16,128], index: 7, kind: output, shape index: {}]  }
   0x1   :  { %13 = vsyncpa [#allocation6], 0 }
   0x2   :  { %14 = vsyncpa [#allocation9], 0  ;;  %s33_s26 = sshll.u32 %s1640_s1, 4  ;;  %s34_s26 = int_to_ptr.hbm [resolvable:$true] %s33_s26 }
   0x3   :  { %15 = vsyncpa [#allocation4], 0  ;;  %s1564_s27 = smov [#allocation5]   ;;  %s20_s8 = sshll.u32 %s1639_s0, 4  ;;  %s21_s8 = int_to_ptr.hbm [resolvable:$true] %s20_s8 }
   0x4   :  { %s35_s28 = sshll.u32 %s1564_s27, 4  ;;  %s1565_s9 = smov 64   ;;  %s36_s28 = int_to_ptr.vmem [resolvable:$true] %s35_s28 }
   0x5   :  { %s1566_s10 = smov 4   ;;  %s1567_s11 = smov [#allocation2]  }
   0x6   :  { %41 = dma.hbm_to_vmem [thread:$0]  %s34_s26, 8192, %s36_s28, [#allocation6], %s1565_s9, %s1565_s9, %s1566_s10  }
   0x7   :  { %s22_s12 = sshll.u32 %s1567_s11, 4  ;;  %s1568_s13 = smov 512   ;;  %s23_s12 = int_to_ptr.vmem [resolvable:$true] %s22_s12 }
   0x8   :  { %s1569_s14 = smov 32   ;;  %s48_s16 = sshll.u32 %s1642_s3, 4  ;;  %s49_s16 = int_to_ptr.hbm [resolvable:$true] %s48_s16 }
   0x9   :  { %28 = dma.hbm_to_vmem [thread:$0]  %s21_s8, 1024, %s23_s12, [#allocation3], %s1568_s13, %s1568_s13, %s1569_s14  }
   0xa   :  { %s1570_s17 = smov [#allocation7]   ;;  %s63_s20 = sshll.u32 %s1644_s5, 4  ;;  %s64_s20 = int_to_ptr.hbm [resolvable:$true] %s63_s20 }
   0xb   :  { %s50_s18 = sshll.u32 %s1570_s17, 4  ;;  %s1571_s21 = smov [#allocation8]   ;;  %s51_s18 = int_to_ptr.vmem [resolvable:$true] %s50_s18 }
   0xc   :  { %56 = dma.hbm_to_vmem [thread:$0]  %s49_s16, 1024, %s51_s18, [#allocation6], %s1565_s9, %s1565_s9, %s1566_s10  }
   0xd   :  { %s65_s22 = sshll.u32 %s1571_s21, 4  ;;  %s66_s22 = int_to_ptr.vmem [resolvable:$true] %s65_s22 }
   0xe   :  { %71 = dma.hbm_to_vmem [thread:$0]  %s64_s20, 1024, %s66_s22, [#allocation9], %s1565_s9, %s1565_s9, %s1566_s10  }
   0xf   :  { %1556 = dma.done.wait [#allocation3], 1024  }
  0x10   :  { %1557 = vsyncadd [#allocation3], 4294966272 }
  0x11   :  { %1558 = dma.done.wait [#allocation6], 9216  }
  0x12   :  { %1559 = vsyncadd [#allocation6], 4294958080 }
  0x13   :  { %1560 = dma.done.wait [#allocation9], 1024  }
  0x14   :  { %1561 = vsyncadd [#allocation9], 4294966272  ;;  %v1345_v0 = vld [vmem:[#allocation5 + $0x38] sm:$0xff]  ;;  %v1344_v4 = vld [vmem:[#allocation5 + $0x30] sm:$0xff]  ;;  %s1573_s29 = smov 128   ;;  %s1574_s30 = smov 8  }
  0x15   :  { %v1353_v1 = vld [vmem:[#allocation5 + $0x78] sm:$0xff]  ;;  %654 = vmatpush.bf16.msra.mxu0 %v1345_v0  ;;  %v1352_v5 = vld [vmem:[#allocation5 + $0x70] sm:$0xff]  ;;  %v1343_v8 = vld [vmem:[#allocation5 + $0x28] sm:$0xff] }
  0x16   :  { %v1361_v2 = vld [vmem:[#allocation5 + $0xb8] sm:$0xff]  ;;  %668 = vmatpush.bf16.msra.mxu1 %v1353_v1  ;;  %v1360_v6 = vld [vmem:[#allocation5 + $0xb0] sm:$0xff]  ;;  %v1351_v9 = vld [vmem:[#allocation5 + $0x68] sm:$0xff] }
  0x17   :  { %v1369_v3 = vld [vmem:[#allocation5 + $0xf8] sm:$0xff]  ;;  %682 = vmatpush.bf16.msra.mxu2 %v1361_v2  ;;  %v1368_v7 = vld [vmem:[#allocation5 + $0xf0] sm:$0xff]  ;;  %v1359_v10 = vld [vmem:[#allocation5 + $0xa8] sm:$0xff] }
  0x18   :  { %696 = vmatpush.bf16.msra.mxu3 %v1369_v3  ;;  %v1367_v11 = vld [vmem:[#allocation5 + $0xe8] sm:$0xff]  ;;  %v1342_v12 = vld [vmem:[#allocation5 + $0x20] sm:$0xff]  ;;  %v1341_v16 = vld [vmem:[#allocation5 + $0x18] sm:$0xff] }
  0x19   :  { %655 = vmatpush.bf16.msra.mxu0 %v1344_v4  ;;  %v1350_v13 = vld [vmem:[#allocation5 + $0x60] sm:$0xff]  ;;  %v1349_v17 = vld [vmem:[#allocation5 + $0x58] sm:$0xff]  ;;  %v1340_v20 = vld [vmem:[#allocation5 + $0x10] sm:$0xff] }
  0x1a   :  { %669 = vmatpush.bf16.msra.mxu1 %v1352_v5  ;;  %v1358_v14 = vld [vmem:[#allocation5 + $0xa0] sm:$0xff]  ;;  %v1357_v18 = vld [vmem:[#allocation5 + $0x98] sm:$0xff]  ;;  %v1348_v21 = vld [vmem:[#allocation5 + $0x50] sm:$0xff] }
  0x1b   :  { %683 = vmatpush.bf16.msra.mxu2 %v1360_v6  ;;  %v1366_v15 = vld [vmem:[#allocation5 + $0xe0] sm:$0xff]  ;;  %v1365_v19 = vld [vmem:[#allocation5 + $0xd8] sm:$0xff]  ;;  %v1356_v22 = vld [vmem:[#allocation5 + $0x90] sm:$0xff] }
  0x1c   :  { %697 = vmatpush.bf16.msra.mxu3 %v1368_v7  ;;  %v1364_v23 = vld [vmem:[#allocation5 + $0xd0] sm:$0xff]  ;;  %v1339_v24 = vld [vmem:[#allocation5 + $0x8] sm:$0xff]  ;;  %v1338_v28 = vld [vmem:[#allocation5] sm:$0xff] }
  0x1d   :  { %656 = vmatpush.bf16.msra.mxu0 %v1343_v8  ;;  %v1347_v25 = vld [vmem:[#allocation5 + $0x48] sm:$0xff]  ;;  %v1346_v29 = vld [vmem:[#allocation5 + $0x40] sm:$0xff]  ;;  %v1377_v32 = vld [vmem:[#allocation5 + $0x138] sm:$0xff] }
  0x1e   :  { %670 = vmatpush.bf16.msra.mxu1 %v1351_v9  ;;  %v1355_v26 = vld [vmem:[#allocation5 + $0x88] sm:$0xff]  ;;  %v1354_v30 = vld [vmem:[#allocation5 + $0x80] sm:$0xff]  ;;  %v1385_v33 = vld [vmem:[#allocation5 + $0x178] sm:$0xff] }
  0x1f   :  { %684 = vmatpush.bf16.msra.mxu2 %v1359_v10  ;;  %v1363_v27 = vld [vmem:[#allocation5 + $0xc8] sm:$0xff]  ;;  %v1362_v31 = vld [vmem:[#allocation5 + $0xc0] sm:$0xff]  ;;  %v1393_v42 = vld [vmem:[#allocation5 + $0x1b8] sm:$0xff] }
  0x20   :  { %698 = vmatpush.bf16.msra.mxu3 %v1367_v11  ;;  %v988_v34 = vld [vmem:[#allocation2 + $0x8] sm:$0xf]  ;;  %v980_v36 = vld [vmem:[#allocation2] sm:$0xf]  ;;  %v1331_v38 = vld [vmem:[#allocation2 + $0xc] sm:$0xf] }
  0x21   :  { %657 = vmatpush.bf16.msra.mxu0 %v1342_v12  ;;  %v1335_v35 = vld [vmem:[#allocation2 + $0x24] sm:$0xf0]  ;;  %v1334_v37 = vld [vmem:[#allocation2 + $0x1c] sm:$0xf0]  ;;  %v990_v39 = vld [vmem:[#allocation2 + $0x28] sm:$0xf0] }
  0x22   :  { %671 = vmatpush.bf16.msra.mxu1 %v1350_v13  ;;  %v1330_v40 = vld [vmem:[#allocation2 + $0x4] sm:$0xf]  ;;  %v1401_v43 = vld [vmem:[#allocation5 + $0x1f8] sm:$0xff]  ;;  %v989_v44 = vor.u32 %v1335_v35, %v988_v34  ;;  %v981_v45 = vor.u32 %v1334_v37, %v980_v36  ;;  %v993_v46 = vor.u32 %v1331_v38, %v990_v39  ;;  %v1376_v48 = vld [vmem:[#allocation5 + $0x130] sm:$0xff] }
  0x23   :  { %685 = vmatpush.bf16.msra.mxu2 %v1358_v14  ;;  %v982_v41 = vld [vmem:[#allocation2 + $0x20] sm:$0xf0]  ;;  %v1384_v49 = vld [vmem:[#allocation5 + $0x170] sm:$0xff]  ;;  %v1375_v52 = vld [vmem:[#allocation5 + $0x128] sm:$0xff] }
  0x24   :  { %699 = vmatpush.bf16.msra.mxu3 %v1366_v15  ;;  %v985_v47 = vor.u32 %v1330_v40, %v982_v41  ;;  %v1392_v50 = vld [vmem:[#allocation5 + $0x1b0] sm:$0xff]  ;;  %v1383_v53 = vld [vmem:[#allocation5 + $0x168] sm:$0xff]  ;;  %v1374_v56 = vld [vmem:[#allocation5 + $0x120] sm:$0xff] }
  0x25   :  { %658 = vmatpush.bf16.msra.mxu0 %v1341_v16  ;;  %v1400_v51 = vld [vmem:[#allocation5 + $0x1f0] sm:$0xff]  ;;  %v1391_v54 = vld [vmem:[#allocation5 + $0x1a8] sm:$0xff]  ;;  %v1382_v57 = vld [vmem:[#allocation5 + $0x160] sm:$0xff] }
  0x26   :  { %672 = vmatpush.bf16.msra.mxu1 %v1349_v17  ;;  %v1399_v55 = vld [vmem:[#allocation5 + $0x1e8] sm:$0xff]  ;;  %v1390_v58 = vld [vmem:[#allocation5 + $0x1a0] sm:$0xff]  ;;  %v1373_v60 = vld [vmem:[#allocation5 + $0x118] sm:$0xff] }
  0x27   :  { %686 = vmatpush.bf16.msra.mxu2 %v1357_v18  ;;  %v1398_v59 = vld [vmem:[#allocation5 + $0x1e0] sm:$0xff]  ;;  %v1381_v61 = vld [vmem:[#allocation5 + $0x158] sm:$0xff]  ;;  %v1372_v0 = vld [vmem:[#allocation5 + $0x110] sm:$0xff] }
  0x28   :  { %700 = vmatpush.bf16.msra.mxu3 %v1365_v19  ;;  %v1389_v62 = vld [vmem:[#allocation5 + $0x198] sm:$0xff]  ;;  %v1380_v1 = vld [vmem:[#allocation5 + $0x150] sm:$0xff]  ;;  %v1371_v4 = vld [vmem:[#allocation5 + $0x108] sm:$0xff] }
  0x29   :  { %659 = vmatpush.bf16.msra.mxu0 %v1340_v20  ;;  %v1397_v63 = vld [vmem:[#allocation5 + $0x1d8] sm:$0xff]  ;;  %v1388_v2 = vld [vmem:[#allocation5 + $0x190] sm:$0xff]  ;;  %v1379_v5 = vld [vmem:[#allocation5 + $0x148] sm:$0xff] }
  0x2a   :  { %673 = vmatpush.bf16.msra.mxu1 %v1348_v21  ;;  %v1396_v3 = vld [vmem:[#allocation5 + $0x1d0] sm:$0xff]  ;;  %v1387_v6 = vld [vmem:[#allocation5 + $0x188] sm:$0xff]  ;;  %v1370_v8 = vld [vmem:[#allocation5 + $0x100] sm:$0xff] }
  0x2b   :  { %687 = vmatpush.bf16.msra.mxu2 %v1356_v22  ;;  %v1395_v7 = vld [vmem:[#allocation5 + $0x1c8] sm:$0xff]  ;;  %v1378_v9 = vld [vmem:[#allocation5 + $0x140] sm:$0xff]  ;;  %v996_v12 = vld [vmem:[#allocation2 + $0x10] sm:$0xf] }
  0x2c   :  { %701 = vmatpush.bf16.msra.mxu3 %v1364_v23  ;;  %v1386_v10 = vld [vmem:[#allocation5 + $0x180] sm:$0xff]  ;;  %v1336_v13 = vld [vmem:[#allocation2 + $0x2c] sm:$0xf0]  ;;  %v1332_v14 = vld [vmem:[#allocation2 + $0x14] sm:$0xf] }
  0x2d   :  { %660 = vmatpush.bf16.msra.mxu0 %v1339_v24  ;;  %v1394_v11 = vld [vmem:[#allocation5 + $0x1c0] sm:$0xff]  ;;  %v998_v15 = vld [vmem:[#allocation2 + $0x30] sm:$0xf0]  ;;  %v1004_v16 = vld [vmem:[#allocation2 + $0x18] sm:$0xf]  ;;  %v997_v20 = vor.u32 %v1336_v13, %v996_v12 }
  0x2e   :  { %674 = vmatpush.bf16.msra.mxu1 %v1347_v25  ;;  %v1337_v17 = vld [vmem:[#allocation2 + $0x34] sm:$0xf0]  ;;  %v1333_v18 = vld [vmem:[#allocation2 + $0x1c] sm:$0xf]  ;;  %v1001_v21 = vor.u32 %v1332_v14, %v998_v15  ;;  %v1408_v25 = vld [vmem:[#allocation7 + $0x30] sm:$0xff] }
  0x2f   :  { %688 = vmatpush.bf16.msra.mxu2 %v1355_v26  ;;  %v1006_v19 = vld [vmem:[#allocation2 + $0x38] sm:$0xf0]  ;;  %v1005_v22 = vor.u32 %v1337_v17, %v1004_v16  ;;  %v1407_v26 = vld [vmem:[#allocation7 + $0x28] sm:$0xff]  ;;  %v1402_v34 = vld [vmem:[#allocation7] sm:$0xff] }
  0x30   :  { %702 = vmatpush.bf16.msra.mxu3 %v1363_v27  ;;  %v1009_v23 = vor.u32 %v1333_v18, %v1006_v19  ;;  %v1409_v24 = vld [vmem:[#allocation7 + $0x38] sm:$0xff]  ;;  %v1406_v27 = vld [vmem:[#allocation7 + $0x20] sm:$0xff]  ;;  %v1411_v12 = vld [vmem:[#allocation8 + $0x8] sm:$0xff] }
  0x31   :  { %661 = vmatpush.bf16.msra.mxu0 %v1338_v28  ;;  %v1405_v28 = vld [vmem:[#allocation7 + $0x18] sm:$0xff]  ;;  %v1410_v13 = vld [vmem:[#allocation8] sm:$0xff] }
  0x32   :  { %675 = vmatpush.bf16.msra.mxu1 %v1346_v29  ;;  %v1404_v29 = vld [vmem:[#allocation7 + $0x10] sm:$0xff]  ;;  %v1417_v39 = vld [vmem:[#allocation8 + $0x38] sm:$0xff]  ;;  %v1430_v14 = vld [vmem:[%s1643_s4] ss:$0 sm:$0xff]  ;;  %s1572_s4 = smov [#allocation10]  }
  0x33   :  { %689 = vmatpush.bf16.msra.mxu2 %v1354_v30  ;;  %s961_s26 = sshll.u32 %s1572_s4, 4  ;;  %s962_s26 = int_to_ptr.vmem [resolvable:$true] %s961_s26 }
  0x34   :  { %703 = vmatpush.bf16.msra.mxu3 %v1362_v31  ;;  %662 = vmatmul.bf16.vlgmr.msra.gmra.mxu0 %v981_v45  ;;  %v1403_v31 = vld [vmem:[#allocation7 + $0x8] sm:$0xff] }
  0x35   :  { %710 = vmatpush.bf16.msrb.mxu0 %v1377_v32  ;;  %676 = vmatmul.bf16.vlgmr.msra.gmra.mxu1 %v985_v47  ;;  %v1415_v47 = vld [vmem:[#allocation8 + $0x28] sm:$0xff] }
  0x36   :  { %724 = vmatpush.bf16.msrb.mxu1 %v1385_v33  ;;  %690 = vmatmul.bf16.vlgmr.msra.gmra.mxu2 %v989_v44  ;;  %v1429_v33 = vld [vmem:[%s1641_s2] ss:$0 sm:$0xff] }
  0x37   :  { %738 = vmatpush.bf16.msrb.mxu2 %v1393_v42  ;;  %704 = vmatmul.bf16.vlgmr.msra.gmra.mxu3 %v993_v46  ;;  %v1416_v42 = vld [vmem:[#allocation8 + $0x30] sm:$0xff] }
  0x38   :  { %752 = vmatpush.bf16.msrb.mxu3 %v1401_v43 }
  0x39   :  { %711 = vmatpush.bf16.msrb.mxu0 %v1376_v48 }
  0x3a   :  { %725 = vmatpush.bf16.msrb.mxu1 %v1384_v49 }
  0x3b   :  { %739 = vmatpush.bf16.msrb.mxu2 %v1392_v50 }
  0x3c   :  { %753 = vmatpush.bf16.msrb.mxu3 %v1400_v51 }
  0x3d   :  { %712 = vmatpush.bf16.msrb.mxu0 %v1375_v52  ;;  %v1414_v52 = vld [vmem:[#allocation8 + $0x20] sm:$0xff] }
  0x3e   :  { %726 = vmatpush.bf16.msrb.mxu1 %v1383_v53 }
  0x3f   :  { %740 = vmatpush.bf16.msrb.mxu2 %v1391_v54 }
  0x40   :  { %754 = vmatpush.bf16.msrb.mxu3 %v1399_v55 }
  0x41   :  { %713 = vmatpush.bf16.msrb.mxu0 %v1374_v56 }
  0x42   :  { %727 = vmatpush.bf16.msrb.mxu1 %v1382_v57 }
  0x43   :  { %741 = vmatpush.bf16.msrb.mxu2 %v1390_v58 }
  0x44   :  { %755 = vmatpush.bf16.msrb.mxu3 %v1398_v59 }
  0x45   :  { %714 = vmatpush.bf16.msrb.mxu0 %v1373_v60 }
  0x46   :  { %728 = vmatpush.bf16.msrb.mxu1 %v1381_v61 }
  0x47   :  { %742 = vmatpush.bf16.msrb.mxu2 %v1389_v62 }
  0x48   :  { %756 = vmatpush.bf16.msrb.mxu3 %v1397_v63 }
  0x49   :  { %715 = vmatpush.bf16.msrb.mxu0 %v1372_v0 }
  0x4a   :  { %729 = vmatpush.bf16.msrb.mxu1 %v1380_v1 }
  0x4b   :  { %743 = vmatpush.bf16.msrb.mxu2 %v1388_v2 }
  0x4c   :  { %757 = vmatpush.bf16.msrb.mxu3 %v1396_v3 }
  0x4d   :  { %716 = vmatpush.bf16.msrb.mxu0 %v1371_v4 }
  0x4e   :  { %730 = vmatpush.bf16.msrb.mxu1 %v1379_v5 }
  0x4f   :  { %744 = vmatpush.bf16.msrb.mxu2 %v1387_v6 }
  0x50   :  { %758 = vmatpush.bf16.msrb.mxu3 %v1395_v7 }
  0x51   :  { %717 = vmatpush.bf16.msrb.mxu0 %v1370_v8 }
  0x52   :  { %731 = vmatpush.bf16.msrb.mxu1 %v1378_v9 }
  0x53   :  { %745 = vmatpush.bf16.msrb.mxu2 %v1386_v10  ;;  %v1413_v10 = vld [vmem:[#allocation8 + $0x18] sm:$0xff] }
  0x54   :  { %759 = vmatpush.bf16.msrb.mxu3 %v1394_v11  ;;  %718 = vmatmul.bf16.vlgmr.msrb.gmra.mxu0 %v997_v20  ;;  %v1412_v11 = vld [vmem:[#allocation8 + $0x10] sm:$0xff] }
  0x55   :  { %732 = vmatmul.bf16.vlgmr.msrb.gmra.mxu1 %v1001_v21  ;;  %841 = vmatpush.bf16.msra.mxu0 %v1409_v24 }
  0x56   :  { %746 = vmatmul.bf16.vlgmr.msrb.gmra.mxu2 %v1005_v22  ;;  %932 = vmatpush.bf16.msra.mxu1 %v1417_v39 }
  0x57   :  { %760 = vmatmul.bf16.vlgmr.msrb.gmra.mxu3 %v1009_v23 }
  0x59   :  { %842 = vmatpush.bf16.msra.mxu0 %v1408_v25 }
  0x5a   :  { %933 = vmatpush.bf16.msra.mxu1 %v1416_v42 }
  0x5d   :  { %843 = vmatpush.bf16.msra.mxu0 %v1407_v26  ;;  %v1431_v26 = vld [vmem:[%s1645_s6] ss:$0 sm:$0xff]  ;;  %s963_s6 = sshll.u32 %s1646_s7, 4  ;;  %s964_s6 = int_to_ptr.hbm [resolvable:$true] %s963_s6 }
  0x5e   :  { %934 = vmatpush.bf16.msra.mxu1 %v1415_v47 }
  0x61   :  { %844 = vmatpush.bf16.msra.mxu0 %v1406_v27 }
  0x62   :  { %935 = vmatpush.bf16.msra.mxu1 %v1414_v52 }
  0x65   :  { %845 = vmatpush.bf16.msra.mxu0 %v1405_v28 }
  0x66   :  { %936 = vmatpush.bf16.msra.mxu1 %v1413_v10 }
  0x69   :  { %846 = vmatpush.bf16.msra.mxu0 %v1404_v29  ;;  %v946_v29 = vlaneseq }
  0x6a   :  { %937 = vmatpush.bf16.msra.mxu1 %v1412_v11 }
  0x6d   :  { %847 = vmatpush.bf16.msra.mxu0 %v1403_v31  ;;  %v947_v31 = vand.u32 127, %v946_v29 }
  0x6e   :  { %938 = vmatpush.bf16.msra.mxu1 %v1411_v12 }
  0x6f   :  { %vm948_vm4 = vcmp.ge.s32.totalorder %v947_v31, 16 }
  0x71   :  { %848 = vmatpush.bf16.msra.mxu0 %v1402_v34 }
  0x72   :  { %939 = vmatpush.bf16.msra.mxu1 %v1410_v13 }
  0xb1   :  { %v663_v30 = vpop.f32.mrf.mxu0 }
  0xb2   :  { %v677_v32 = vpop.f32.mrf.mxu1  ;;  %v664_v37 = vadd.f32 %v1429_v33, %v663_v30 }
  0xb4   :  { %v678_v40 = vadd.f32 %v677_v32, %v664_v37 }
  0xb9   :  { %v691_v35 = vpop.f32.mrf.mxu2  ;;  %v665_v38 = vpop.f32.mrf.mxu0 }
  0xba   :  { %v705_v36 = vpop.f32.mrf.mxu3  ;;  %v679_v41 = vpop.f32.mrf.mxu1  ;;  %v666_v43 = vadd.f32 %v1429_v33, %v665_v38  ;;  %v692_v44 = vadd.f32 %v691_v35, %v678_v40 }
  0xbc   :  { %v680_v48 = vadd.f32 %v679_v41, %v666_v43  ;;  %v706_v50 = vadd.f32 %v705_v36, %v692_v44 }
  0xc1   :  { %v693_v45 = vpop.f32.mrf.mxu2 }
  0xc2   :  { %v707_v46 = vpop.f32.mrf.mxu3  ;;  %v694_v53 = vadd.f32 %v693_v45, %v680_v48 }
  0xc4   :  { %v708_v57 = vadd.f32 %v707_v46, %v694_v53 }
  0xd1   :  { %v719_v49 = vpop.f32.mrf.mxu0 }
  0xd2   :  { %v733_v51 = vpop.f32.mrf.mxu1  ;;  %v720_v54 = vadd.f32 %v719_v49, %v706_v50 }
  0xd4   :  { %v734_v58 = vadd.f32 %v733_v51, %v720_v54 }
  0xd9   :  { %v747_v55 = vpop.f32.mrf.mxu2  ;;  %v721_v59 = vpop.f32.mrf.mxu0 }
  0xda   :  { %v761_v56 = vpop.f32.mrf.mxu3  ;;  %v748_v60 = vadd.f32 %v747_v55, %v734_v58  ;;  %v722_v61 = vadd.f32 %v721_v59, %v708_v57  ;;  %v735_v62 = vpop.f32.mrf.mxu1 }
  0xdc   :  { %v762_v63 = vadd.f32 %v761_v56, %v748_v60  ;;  %v736_v0 = vadd.f32 %v735_v62, %v722_v61 }
  0xde   :  { %v768_v4 = vmul.f32 0.01, %v762_v63  ;;  %vm766_vm0 = vcmp.ge.f32.partialorder %v762_v63, 0.0 }
  0xe0   :  { %v770_v7 = vsel %vm766_vm0, %v762_v63, %v768_v4 }
  0xe1   :  { %v749_v1 = vpop.f32.mrf.mxu2 }
  0xe2   :  { %v750_v2 = vadd.f32 %v749_v1, %v736_v0  ;;  %v763_v3 = vpop.f32.mrf.mxu3 }
  0xe4   :  { %v764_v5 = vadd.f32 %v763_v3, %v750_v2 }
  0xe6   :  { %vm767_vm1 = vcmp.ge.f32.partialorder %v764_v5, 0.0  ;;  %v769_v6 = vmul.f32 0.01, %v764_v5 }
  0xe8   :  { %v771_v8 = vsel %vm767_vm1, %v764_v5, %v769_v6 }
  0xe9   :  { %v772_v9 = vpack.c.bf16 %v771_v8, %v770_v7 }
  0xeb   :  { %849 = vmatmul.bf16.vlgmr.msra.gmra.mxu0 %v772_v9 }
 0x168   :  { %v850_v15 = vpop.f32.mrf.mxu0 }
 0x169   :  { %v851_v16 = vadd.f32 %v1430_v14, %v850_v15 }
 0x16b   :  { %v855_v17 = vadd.f32 %v851_v16, %v770_v7 }
 0x16d   :  { %v859_v20 = vmul.f32 0.01, %v855_v17  ;;  %vm857_vm2 = vcmp.ge.f32.partialorder %v855_v17, 0.0 }
 0x16f   :  { %v861_v23 = vsel %vm857_vm2, %v855_v17, %v859_v20 }
 0x170   :  { %v852_v18 = vpop.f32.mrf.mxu0 }
 0x171   :  { %v853_v19 = vadd.f32 %v1430_v14, %v852_v18 }
 0x173   :  { %v856_v21 = vadd.f32 %v853_v19, %v771_v8 }
 0x175   :  { %vm858_vm3 = vcmp.ge.f32.partialorder %v856_v21, 0.0  ;;  %v860_v22 = vmul.f32 0.01, %v856_v21 }
 0x177   :  { %v862_v24 = vsel %vm858_vm3, %v856_v21, %v860_v22 }
 0x178   :  { %v863_v25 = vpack.c.bf16 %v862_v24, %v861_v23 }
 0x17a   :  { %940 = vmatmul.bf16.vlgmr.msra.gmra.mxu1 %v863_v25 }
 0x1f7   :  { %v941_v27 = vpop.f32.mrf.mxu1 }
 0x1f8   :  { %v942_v28 = vadd.f32 %v1431_v26, %v941_v27 }
 0x1fa   :  { %v949_v30 = vmul.f32 1.442695, %v942_v28 }
 0x1fc   :  { %1432 = vpow2.f32 %v949_v30 }
 0x1ff   :  { %v943_v32 = vpop.f32.mrf.mxu1 }
 0x200   :  { %v944_v33 = vadd.f32 %v1431_v26, %v943_v32 }
 0x202   :  { %v1433_v34 = vpop.eup %1432  ;;  %v951_v35 = vmul.f32 1.442695, %v944_v33 }
 0x203   :  { %v953_v36 = vsel %vm948_vm4, %v1433_v34, %v942_v28 }
 0x204   :  { %955 = vst [vmem:[#allocation10] sm:$0xff] %v953_v36  ;;  %1434 = vpow2.f32 %v951_v35 }
 0x20a   :  { %v1435_v37 = vpop.eup %1434 }
 0x20b   :  { %v954_v38 = vsel %vm948_vm4, %v1435_v37, %v944_v33 }
 0x20c   :  { %956 = vst [vmem:[#allocation10 + $0x8] sm:$0xff] %v954_v38 }
 0x20d   :  { %969 = dma.vmem_to_hbm [thread:$0]  %s962_s26, 256, %s964_s6, [#allocation4], %s1573_s29, %s1573_s29, %s1574_s30  }
 0x20e   :  { %1562 = dma.done.wait [#allocation4], 256  }
 0x20f   :  { %1563 = vsyncadd [#allocation4], 4294967040 }
 0x210   :  { %974 = vsyncpa [#allocation3], 1 }
 0x211   :  { %975 = vsyncpa [#allocation6], 1 }
 0x212   :  { %976 = vsyncpa [#allocation9], 1 }
 0x213   :  { %977 = vsyncpa [#allocation4], 1 }

</bundles_post_ra>
